<compile_context>
chip_gen: v7x
topology: tpu7x:2x2x1
jax: 0.10.0
libtpu: 0.0.40
codegen_flags: <defaults>
</compile_context>

<pallas_src>
import jax
import jax.numpy as jnp
from jax.experimental import pallas as pl
from jax.experimental.pallas import tpu as pltpu


def _round_up(x, m):
    return ((x + m - 1) // m) * m


def _cls_seg_kernel(w_ref, b_ref, x_ref, o_ref):
    # w_ref: (K, C)        compute dtype, resident across the grid
    # b_ref: (K, 1)        f32, resident
    # x_ref: (C, TILE_HW)  compute dtype (N dim squeezed out by BlockSpec)
    # o_ref: (K, TILE_HW)  out dtype — lane-dense (TILE_HW multiple of 128)
    acc = jnp.dot(w_ref[...], x_ref[...], preferred_element_type=jnp.float32)
    o_ref[...] = (acc + b_ref[...]).astype(o_ref.dtype)


def cls_seg_pallas(x_nchw, weight, bias, *, tile_hw=2048,
                   compute_dtype=jnp.bfloat16):
    """1x1 conv (conv_seg) on an NCHW feature map via a Pallas matmul kernel.

    Args:
      x_nchw: (N, C, H, W) feature map (output of _transform_inputs / dropout).
      weight: (num_classes, C) — PyTorch Conv2d weight (out, in, 1, 1) squeezed.
      bias:   (num_classes,)
      tile_hw: requested pixel-tile width (rounded to a multiple of 128).
      compute_dtype: MXU input dtype (bf16 by default; accumulation stays f32).
    Returns:
      (N, num_classes, H, W) seg logits in x_nchw.dtype.
    """
    N, C, H, W = x_nchw.shape
    num_classes = weight.shape[0]
    out_dtype = x_nchw.dtype

    hw = H * W
    # Lane-dense pixel tile: multiple of 128, no larger than needed.
    tile = min(int(tile_hw), _round_up(hw, 128))
    tile = _round_up(tile, 128)
    hw_pad = _round_up(hw, tile)
    grid = (N, hw_pad // tile)

    # NCHW -> (N, C, H*W): trailing-dim reshape, no data movement / transpose.
    x3d = x_nchw.reshape(N, C, hw)
    if hw_pad != hw:
        x3d = jnp.pad(x3d, ((0, 0), (0, 0), (0, hw_pad - hw)))
    # bf16 halves the dominant HBM read; in a fused pipeline XLA folds this
    # cast into the producing backbone layer so it costs no extra HBM pass.
    if x3d.dtype != compute_dtype:
        x3d = x3d.astype(compute_dtype)
    w2d = weight.astype(compute_dtype)                         # (K, C)
    b2d = bias.astype(jnp.float32).reshape(num_classes, 1)     # (K, 1)

    # Advisory cost estimate for XLA scheduling around this mem-bound call.
    flops = 2 * N * hw_pad * C * num_classes
    bytes_accessed = int(
        x3d.size * jnp.dtype(compute_dtype).itemsize
        + w2d.size * jnp.dtype(compute_dtype).itemsize
        + b2d.size * 4
        + N * num_classes * hw_pad * jnp.dtype(out_dtype).itemsize)

    # VMEM footprint: double-buffered x / out tiles + resident weight & bias.
    cbytes = jnp.dtype(compute_dtype).itemsize
    obytes = jnp.dtype(out_dtype).itemsize
    vmem_est = (2 * C * tile * cbytes
                + 2 * num_classes * tile * obytes
                + num_classes * C * cbytes + num_classes * 4)
    vmem_limit = None
    if vmem_est > (12 << 20):
        # Raise scoped VMEM only when needed; cap under v7x's 64 MiB physical.
        vmem_limit = int(min(2 * vmem_est, 56 << 20))

    out3d = pl.pallas_call(
        _cls_seg_kernel,
        out_shape=jax.ShapeDtypeStruct((N, num_classes, hw_pad), out_dtype),
        grid_spec=pltpu.PrefetchScalarGridSpec(
            num_scalar_prefetch=0,
            grid=grid,
            in_specs=[
                pl.BlockSpec((num_classes, C), lambda n, h: (0, 0)),   # weight
                pl.BlockSpec((num_classes, 1), lambda n, h: (0, 0)),   # bias
                pl.BlockSpec((None, C, tile), lambda n, h: (n, 0, h)),  # x
            ],
            out_specs=pl.BlockSpec((None, num_classes, tile),
                                   lambda n, h: (n, 0, h)),
        ),
        compiler_params=pltpu.CompilerParams(
            dimension_semantics=("parallel", "parallel"),
            vmem_limit_bytes=vmem_limit,
        ),
        cost_estimate=pl.CostEstimate(flops=flops, transcendentals=0,
                                      bytes_accessed=bytes_accessed),
    )(w2d, b2d, x3d)

    if hw_pad != hw:
        out3d = out3d[:, :, :hw]
    return out3d.reshape(N, num_classes, H, W)


class BaseDecodeHeadPallas:
    """Minimal JAX/Pallas port of mmseg BaseDecodeHead (inference semantics)."""

    def __init__(self, in_channels, channels, *, num_classes,
                 dropout_ratio=0.1, in_index=-1, input_transform=None,
                 align_corners=False, key=None):
        assert input_transform is None, \
            "only input_transform=None (single-feature select) implemented"
        assert isinstance(in_channels, int) and isinstance(in_index, int)
        self.in_channels = in_channels
        self.channels = channels
        self.num_classes = num_classes
        self.dropout_ratio = dropout_ratio
        self.in_index = in_index
        self.input_transform = input_transform
        self.align_corners = align_corners

        # init_weights(): normal_init(conv_seg, mean=0, std=0.01), zero bias.
        key = jax.random.PRNGKey(0) if key is None else key
        self.conv_seg_w = 0.01 * jax.random.normal(
            key, (num_classes, channels), dtype=jnp.float32)
        self.conv_seg_b = jnp.zeros((num_classes,), dtype=jnp.float32)

    def _transform_inputs(self, inputs):
        # input_transform is None -> select a single feature map by index.
        return inputs[self.in_index]

    def cls_seg(self, feat):
        # TODO(synk): Dropout2d is identity in eval mode; training-mode channel
        # dropout (pltpu.prng_*) not implemented here.
        return cls_seg_pallas(feat, self.conv_seg_w, self.conv_seg_b)

    def forward(self, inputs):
        feat = self._transform_inputs(inputs)
        return self.cls_seg(feat)


if __name__ == "__main__":
    key = jax.random.PRNGKey(0)
    k_feat, k_feat2, k_w = jax.random.split(key, 3)

    N, C, H, W = 2, 32, 16, 16      # channels (pre-conv_seg) = 32
    NUM_CLASSES = 8

    # A single-level feature list; in_index=-1 selects the last entry.
    feat = jax.random.normal(k_feat, (N, C, H, W), dtype=jnp.float32)
    inputs = [feat]

    head = BaseDecodeHeadPallas(in_channels=C, channels=C,
                                num_classes=NUM_CLASSES, key=k_w)

    out = head.forward(inputs)
    out = jax.block_until_ready(out)
    assert out.shape == (N, NUM_CLASSES, H, W)

    # Reference with the same bf16 rounding the kernel applies (f32 accumulate).
    fx = feat.astype(jnp.bfloat16).astype(jnp.float32)
    fw = head.conv_seg_w.astype(jnp.bfloat16).astype(jnp.float32)
    ref = jnp.einsum("nchw,kc->nkhw", fx, fw) \
        + head.conv_seg_b[None, :, None, None]
    assert jnp.allclose(out, ref, atol=2e-3, rtol=2e-3)

    # Second case: H*W not a multiple of 128 exercises the pad/slice path.
    H2, W2 = 13, 9
    feat2 = jax.random.normal(k_feat2, (1, C, H2, W2), dtype=jnp.float32)
    out2 = jax.block_until_ready(head.forward([feat2]))
    assert out2.shape == (1, NUM_CLASSES, H2, W2)
    fx2 = feat2.astype(jnp.bfloat16).astype(jnp.float32)
    ref2 = jnp.einsum("nchw,kc->nkhw", fx2, fw) \
        + head.conv_seg_b[None, :, None, None]
    assert jnp.allclose(out2, ref2, atol=2e-3, rtol=2e-3)

    print("KERNEL_OK")
</pallas_src>

<mosaic_0001>
module attributes {stable_mosaic.version = 11 : i64} {
  func.func @_cls_seg_kernel(%arg0: i32, %arg1: i32, %arg2: memref<8x32xbf16, #tpu.memory_space<vmem>>, %arg3: memref<8x1xf32, #tpu.memory_space<vmem>>, %arg4: memref<1x32x256xbf16, #tpu.memory_space<vmem>>, %arg5: memref<1x8x256xf32, #tpu.memory_space<vmem>>) attributes {dimension_semantics = [#tpu.dimension_semantics<parallel>, #tpu.dimension_semantics<parallel>], iteration_bounds = array<i64: 2, 1>, scalar_prefetch = 0 : i64, scratch_operands = 0 : i64, tpu.core_type = #tpu.core_type<tc>, window_params = [{pipeline_mode = #tpu.pipeline_mode<synchronous>, transform_indices = @transform_0, window_bounds = array<i64: 8, 32>}, {pipeline_mode = #tpu.pipeline_mode<synchronous>, transform_indices = @transform_1, window_bounds = array<i64: 8, 1>}, {transform_indices = @transform_2, window_bounds = array<i64: 1, 32, 256>}, {transform_indices = @transform_3, window_bounds = array<i64: 1, 8, 256>}]} {
    %c0 = arith.constant 0 : index
    %c0_0 = arith.constant 0 : index
    %0 = vector.load %arg2[%c0, %c0_0] : memref<8x32xbf16, #tpu.memory_space<vmem>>, vector<8x32xbf16>
    %c0_1 = arith.constant 0 : index
    %c0_2 = arith.constant 0 : index
    %c0_3 = arith.constant 0 : index
    %1 = vector.load %arg4[%c0_1, %c0_2, %c0_3] : memref<1x32x256xbf16, #tpu.memory_space<vmem>>, vector<1x32x256xbf16>
    %2 = vector.shape_cast %1 : vector<1x32x256xbf16> to vector<32x256xbf16>
    %cst = arith.constant dense<0.000000e+00> : vector<8x256xf32>
    %3 = tpu.matmul %0, %2, %cst {dimension_numbers = #tpu.dot_dimension_numbers<[1], [0], [0], [1], [0, 0, 1, 1], [], []>} : vector<8x32xbf16>, vector<32x256xbf16>, vector<8x256xf32> -> vector<8x256xf32>
    %c0_4 = arith.constant 0 : index
    %c0_5 = arith.constant 0 : index
    %4 = vector.load %arg3[%c0_4, %c0_5] : memref<8x1xf32, #tpu.memory_space<vmem>>, vector<8x1xf32>
    %5 = vector.broadcast %4 : vector<8x1xf32> to vector<8x256xf32>
    %6 = arith.addf %3, %5 : vector<8x256xf32>
    %c0_6 = arith.constant 0 : index
    %c0_7 = arith.constant 0 : index
    %c0_8 = arith.constant 0 : index
    %7 = vector.load %arg5[%c0_6, %c0_7, %c0_8] : memref<1x8x256xf32, #tpu.memory_space<vmem>>, vector<1x8x256xf32>
    %8 = vector.shape_cast %7 : vector<1x8x256xf32> to vector<8x256xf32>
    %9 = vector.shape_cast %6 : vector<8x256xf32> to vector<1x8x256xf32>
    tpu.vector_store %arg5[%c0_6, %c0_7, %c0_8], %9 {strides = array<i32>} : memref<1x8x256xf32, #tpu.memory_space<vmem>>, vector<1x8x256xf32>,
    return
  }
  func.func @transform_0(%arg0: i32, %arg1: i32) -> (i32, i32) {
    %c0_i32 = arith.constant 0 : i32
    %c0_i32_0 = arith.constant 0 : i32
    %c0_i32_1 = arith.constant 0 : i32
    return %c0_i32, %c0_i32_0 : i32, i32
  }
  func.func @transform_1(%arg0: i32, %arg1: i32) -> (i32, i32) {
    %c0_i32 = arith.constant 0 : i32
    %c0_i32_0 = arith.constant 0 : i32
    %c0_i32_1 = arith.constant 0 : i32
    return %c0_i32, %c0_i32_0 : i32, i32
  }
  func.func @transform_2(%arg0: i32, %arg1: i32) -> (i32, i32, i32) {
    %c0_i32 = arith.constant 0 : i32
    %c0_i32_0 = arith.constant 0 : i32
    return %arg0, %c0_i32, %arg1 : i32, i32, i32
  }
  func.func @transform_3(%arg0: i32, %arg1: i32) -> (i32, i32, i32) {
    %c0_i32 = arith.constant 0 : i32
    %c0_i32_0 = arith.constant 0 : i32
    return %arg0, %c0_i32, %arg1 : i32, i32, i32
  }
}

</mosaic_0001>

<bundles_post_ra>
// kernel: tpu_custom_call.1
= control target key start
LH: loop header
LB: loop body
LE: loop exit
PB: predicated region body
PF: predicated region fallthrough
CT: control target
= control target key end

     0   :  { %8 = vsyncpa [#allocation3], 0  ;;  %s802_s0 = inlined_call_operand.vmem [shape: bf16[8,32], index: 0, kind: input, shape index: {}]   ;;  %s803_s1 = inlined_call_operand.vmem [shape: f32[8,1], index: 1, kind: input, shape index: {}]   ;;  %s804_s2 = inlined_call_operand.hbm [shape: bf16[2,32,256], index: 2, kind: input, shape index: {}]   ;;  %s805_s3 = inlined_call_operand.hbm [shape: f32[2,8,256], index: 3, kind: output, shape index: {}]  }
   0x1   :  { %10 = vsyncpa [#allocation3 + $0x1], 0 }
   0x2   :  { %11 = vsyncpa [#allocation4], 0 }
   0x3   :  { %13 = vsyncpa [#allocation4 + $0x1], 0  ;;  %s622_s12 = smov 0   ;;  %s624_s13 = smov 0  }
   0x4   :  { %s626_s14 = smov 0   ;;  %s628_s15 = smov 0  }
   0x5   :  { %s630_s16 = smov 0   ;;  %s632_s17 = smov 0  }
   0x6 LB: > { %s389_s18 = sadd.s32 4294967295, %s595_s17   ;;  %s390_s19 = sadd.s32 4294967294, %s595_s17   ;;  %s595_s17 = sphi %s632_s17, %s19_s17   ;;  %s591_s16 = sphi %s630_s16, %s820_s16   ;;  %s587_s15 = sphi %s628_s15, %s819_s15   ;;  %s583_s14 = sphi %s626_s14, %s818_s14   ;;  %s579_s13 = sphi %s624_s13, %s817_s13   ;;  %s575_s12 = sphi %s622_s12, %s816_s12  }
   0x7   : > { %s31_s20 = sadd.s32 1, %s591_s16  ;;  %s82_s21 = sadd.s32 1, %s583_s14 }
   0x8   : > { %p33_p0 = scmp.ge.s32.totalorder %s31_s20, 2  ;;  %p89_p1 = scmp.ne.s32.totalorder %s583_s14, %s579_s13 }
   0x9   : > { %p90_p2 = scmp.eq.s32.totalorder %s595_s17, 0  ;;  %p95_p3 = scmp.ne.s32.totalorder %s579_s13, %s575_s12 }
   0xa   : > { %s822_s20 = smov (%p33_p0, %s31_s20), 0  ;;  %p96_p5 = scmp.eq.s32.totalorder %s389_s18, 0 }
   0xb   : > { %p663_p4 = por %p90_p2, %p89_p1  ;;  %s77_s23 = ssub.s32 %s591_s16, %s822_s20 }
   0xc   : > { %p121_p6 = scmp.eq.s32.totalorder %s389_s18, 1  ;;  %p80_p7 = scmp.eq.s32.totalorder %s77_s23, 0 }
   0xd   : > { %p669_p8 = por %p96_p5, %p95_p3  ;;  %p127_p10 = scmp.eq.s32.totalorder %s390_s19, 1 }
   0xe   : > { %p673_p9 = por %p121_p6, %p89_p1  ;;  %p423_p13 = scmp.lt.s32.totalorder %s595_s17, 2 }
   0xf   : > { %s678_s26 = scalar_select %p80_p7, %s583_s14, %s82_s21  }
  0x10   : > { %s809_s25 = scalar_select %p673_p9, 1, 0 }
  0x11   : > { %p680_p11 = por %p127_p10, %p95_p3  ;;  %s153_s28 = sand.u32 1, %s583_s14  }
  0x12   : > { %s393_s29 = sshll.u32 %s153_s28, 5  ;;  %s409_s30 = sshll.u32 %s591_s16, 9 }
  0x13   : > { %s810_s27 = scalar_select %p680_p11, 1, 0 }
  0x14   : > { %s691_s6 = scalar_lea.hbm %s804_s2, %s409_s30  ;;  %s157_s7 = scalar_lea.vmem [#allocation2], %s393_s29 }
  0x15   : > { %s166_s8 = sshll.u32 %s157_s7, 4  ;;  %p697_p0 = pnand %p423_p13, %p663_p4  ;;  %s693_s8 = int_to_ptr.vmem [resolvable:$true] %s166_s8 }
  0x16   : > { %s702_s10 = scalar_lea.sflag [#allocation3], %s153_s28  ;;  %s483_s11 = scalar_lea.hbm %s691_s6, 512 }
  0x17   : > { %p484_p2 = scmp.ne.s32.totalorder %s691_s6, %s483_s11  ;;  %p485_p3 = pneg %p697_p0 }
  0x18   : > { %s488_s21 = scalar_lea.hbm %s804_s2, 1024  ;;  %p489_p4 = scmp.lt.u32.totalorder %s691_s6, %s804_s2 }
  0x19   : > { %p486_p5 = pnand %p485_p3, %p484_p2  ;;  %p490_p7 = scmp.lt.u32.totalorder %s488_s21, %s483_s11 }
  0x1a   : > { %p492_p13 = scmp.lt.u32.totalorder %s483_s11, %s691_s6 }
  0x1b   : > { %p487_p6 = pneg %p486_p5  ;;  %p491_p10 = por %p490_p7, %p489_p4 }
  0x1d   : > { %p493_p12 = por %p492_p13, %p491_p10 }
  0x1f   : > { %p494_p1 = pnand %p493_p12, %p487_p6 }
  0x21   : > { %497 = shalt.err (!%p494_p1)
}
  0x22   : > { %s498_s28 = scalar_lea.vmem %s693_s8, 512  ;;  %s597_s29 = smov [#allocation2]  }
  0x23   : > { %p499_p2 = scmp.ne.s32.totalorder %s693_s8, %s498_s28  ;;  %s503_s30 = sshll.u32 %s597_s29, 4  ;;  %s504_s30 = int_to_ptr.vmem [resolvable:$false] %s503_s30 }
  0x24   : > { %s505_s4 = scalar_lea.vmem %s504_s30, 1024  ;;  %p506_p9 = scmp.lt.s32.totalorder %s693_s8, %s504_s30 }
  0x25   : > { %p501_p5 = pnand %p499_p2, %p485_p3  ;;  %p507_p4 = scmp.lt.s32.totalorder %s505_s4, %s498_s28 }
  0x27   : > { %p502_p11 = pneg %p501_p5  ;;  %p508_p7 = por %p507_p4, %p506_p9 }
  0x29   : > { %p509_p10 = pnand %p508_p7, %p502_p11 }
  0x2b   : > { %512 = shalt.err (!%p509_p10)
}
  0x2c   : > { %s598_s5 = smov 128   ;;  %s599_s7 = smov 8  }
  0x2d   : > { %418 = dma.hbm_to_vmem [thread:$0]  (!%p697_p0), %s691_s6, 512, %s693_s8, %s702_s10, %s598_s5, %s598_s5, %s599_s7  }
  0x2e   : > { %p174_p12 = scmp.lt.s32.totalorder %s595_s17, 3  ;;  %p812_p1 = scmp.ge.s32.totalorder %s595_s17, 1 }
  0x30   : > { %p175_p3 = pnand %p812_p1, %p174_p12 }
  0x31   : > { %s734_s11 = sand.u32 (!%p175_p3), 1, %s579_s13  }
  0x32   : > { %178 = sbr.rel (%p175_p3) target bundleno = 297 (0x129), region = 32  ;;  %s397_s18 = sshll.u32 (!%p175_p3), %s734_s11, 5 }
  0x33   : > { %s181_s19 = scalar_lea.sflag (!%p175_p3), [#allocation3], %s734_s11  ;;  %s184_s21 = scalar_lea.vmem (!%p175_p3), [#allocation2], %s397_s18 }
  0x39   : > { %566 = dma.done.wait (%p669_p8), %s181_s19, 512  }
  0x3a   : > { %568 = vsyncadd (%p669_p8), %s181_s19, 4294966784  ;;  %v600_v0 = vmov 0   ;;  %v477_v1 = vld [vmem:[%s184_s21 + $0x4] ss:$8 sps:$4 sm:$0xff]   ;;  %v479_v2 = vld [vmem:[%s184_s21] ss:$8 sps:$4 sm:$0xff]  }
  0x3b   : > { %277 = vmatprep.mubr.bf16.mxu0 %v600_v0  ;;  %476 = vset.pattern.permute.xlu0 %v600_v0  ;;  %v480_v3 = vld [vmem:[%s184_s21 + $0x14] ss:$8 sps:$4 sm:$0xff]   ;;  %v482_v4 = vld [vmem:[%s184_s21 + $0x10] ss:$8 sps:$4 sm:$0xff]   ;;  %v215_v5 = vld [vmem:[%s803_s1] sm:$0xff]  ;;  %vm241_vm0 = vcmask 261120  }
  0x3c   : > { %245 = vmatprep.subr.bf16.mxu0 %v477_v1  ;;  %218 = vperm.xlu0 %476, %v215_v5   ;;  %v210_v6 = vld [vmem:[%s802_s0] sm:$0xf]  ;;  %s398_s10 = sshll.u32 %s734_s11, 4  ;;  %s410_s22 = sshll.u32 %s587_s15, 8 }
  0x3d   : > { %246 = vmatpush1.bf16.msra.mxu0 %v479_v2  ;;  %s206_s23 = scalar_lea.vmem [#allocation5], %s398_s10  ;;  %s753_s4 = scalar_lea.hbm %s805_s3, %s410_s22 }
  0x3e   : > { %247 = vmatprep.subr.bf16.mxu0 %v480_v3  ;;  %s305_s28 = sshll.u32 %s206_s23, 4  ;;  %s289_s15 = scalar_lea.sflag [#allocation4], %s734_s11  ;;  %s755_s28 = int_to_ptr.vmem [resolvable:$true] %s305_s28 }
  0x3f   : > { %s513_s5 = scalar_lea.vmem %s755_s28, 256  ;;  %p813_p9 = scmp.ne.s32.totalorder %s809_s25, 0 }
  0x40   : > { %p514_p8 = scmp.ne.s32.totalorder %s755_s28, %s513_s5  ;;  %s601_s7 = smov [#allocation5]  }
  0x41   : > { %248 = vmatpush1.bf16.msra.mxu0 %v482_v4  ;;  %s517_s18 = sshll.u32 %s601_s7, 4  ;;  %s518_s18 = int_to_ptr.vmem [resolvable:$false] %s517_s18 }
  0x42   : > { %p515_p11 = pnand %p514_p8, %p813_p9  ;;  %s519_s19 = scalar_lea.vmem %s518_s18, 512 }
  0x43   : > { %p520_p6 = scmp.lt.s32.totalorder %s755_s28, %s518_s18  ;;  %p521_p13 = scmp.lt.s32.totalorder %s519_s19, %s513_s5 }
  0x44   : > { %403 = vmatmul.mubr.msk.bf16.vlgmr.msra.gmra.mrb[0].mxu0 %vm241_vm0, %v210_v6  ;;  %p516_p0 = pneg %p515_p11 }
  0x45   : > { %p522_p2 = por %p521_p13, %p520_p6 }
  0x47   : > { %p523_p5 = pnand %p522_p2, %p516_p0 }
  0xbb   : > { %v219_v7 = vpop.permute.xlu0 %218 }
 0x117   : > { %v279_v8 = vpop.f32.mrb[0].mxu0 }
 0x118   : > { %v280_v9 = vadd.f32 %v279_v8, %v219_v7  ;;  %v281_v10 = vpop.f32.mrb[1].mxu0 }
 0x119   : > { %v282_v11 = vadd.f32 %v281_v10, %v219_v7  ;;  %v283_v12 = vpop.f32.mrb[2].mxu0 }
 0x11a   : > { %286 = vst [vmem:[%s206_s23] sm:$0xff] %v280_v9  ;;  %v284_v13 = vpop.f32.mrb[3].mxu0 }
 0x11b   : > { %287 = vst [vmem:[%s206_s23 + $0x8] sm:$0xff] %v282_v11 }
 0x11c   : > { %526 = shalt.err (!%p523_p5)
}
 0x11d   : > { %s527_s11 = scalar_lea.hbm %s753_s4, 256  ;;  %s531_s8 = scalar_lea.hbm %s805_s3, 512 }
 0x11e   : > { %p528_p4 = scmp.ne.s32.totalorder %s753_s4, %s527_s11  ;;  %p532_p12 = scmp.lt.u32.totalorder %s753_s4, %s805_s3 }
 0x11f   : > { %p533_p1 = scmp.lt.u32.totalorder %s531_s8, %s527_s11  ;;  %p535_p8 = scmp.lt.u32.totalorder %s527_s11, %s753_s4 }
 0x120   : > { %p529_p7 = pnand %p528_p4, %p813_p9 }
 0x121   : > { %p534_p3 = por %p533_p1, %p532_p12 }
 0x122   : > { %p530_p10 = pneg %p529_p7 }
 0x123   : > { %p536_p11 = por %p535_p8, %p534_p3 }
 0x125   : > { %p537_p0 = pnand %p536_p11, %p530_p10 }
 0x127   : > { %540 = shalt.err (!%p537_p0)
}
 0x128   : > { %413 = dma.vmem_to_hbm [thread:$0]  (%p813_p9), %s755_s28, 256, %s753_s4, %s289_s15  }
 0x129 PF: > { %s317_s10 = sand.u32 1, %s575_s12   ;;  %p814_p6 = scmp.ne.s32.totalorder %s810_s27, 0 }
 0x12a   : > { %p815_p13 = scmp.ge.s32.totalorder %s595_s17, 2  ;;  %s318_s22 = scalar_lea.sflag [#allocation4], %s317_s10 }
 0x12c   : > { %p420_p2 = pnand %p815_p13, %p814_p6 }
 0x12e   : > { %570 = dma.done.wait (!%p420_p2), %s318_s22, 256  }
 0x12f   : > { %572 = vsyncadd (!%p420_p2), %s318_s22, 4294967040  ;;  %s19_s17 = sadd.s32 1, %s595_s17   ;;  %s816_s12 = smov %s579_s13 }
 0x130   : > { %p16_p5 = scmp.ge.s32.totalorder %s19_s17, 4   ;;  %s817_s13 = smov %s583_s14 }
 0x131   : > { %s818_s14 = smov %s678_s26  ;;  %s819_s15 = smov %s591_s16 }
 0x132   : > { %s820_s16 = smov %s822_s20  ;;  %18 = sbr.rel (!%p16_p5) target bundleno = 6 (0x6), region = 77 }
 0x139   :  { %323 = vsyncpa [#allocation3], 1 }
 0x13a   :  { %325 = vsyncpa [#allocation3 + $0x1], 1 }
 0x13b   :  { %326 = vsyncpa [#allocation4], 1 }
 0x13c   :  { %328 = vsyncpa [#allocation4 + $0x1], 1 }

</bundles_post_ra>
